<compile_context>
chip_gen: v7x
topology: tpu7x:2x2x1
jax: 0.10.0
libtpu: 0.0.40
codegen_flags: <defaults>
</compile_context>

<pallas_src>
import functools
import math

import jax
import jax.numpy as jnp
from jax.experimental import pallas as pl
from jax.experimental.pallas import tpu as pltpu


def _mha_kernel(q_ref, k_ref, v_ref,
                wq_ref, wk_ref, wv_ref, wc_ref,
                bq_ref, bk_ref, bv_ref, bc_ref,
                out_ref, *, n_head, scale, compute_dtype):
    """One grid step = one tile of TB batch rows, all heads fused.

    q/k/v_ref      : (TB, S, D)  activations for this batch tile
    wq/wk/wv/wc_ref: (D, D)      full projection weights (VMEM-resident)
    b*_ref         : (1, D)      biases (f32)
    out_ref        : (TB, S, D)  output tile
    """
    tb, s_len, d_model = q_ref.shape
    n_d = d_model // n_head
    m = tb * s_len
    cd = compute_dtype

    def proj(x_ref, w_ref, b_ref):
        # (TB*S, D) @ (D, D) on the MXU, f32 accumulate, bias add in f32.
        x = x_ref[...].reshape(m, d_model).astype(cd)
        y = jnp.dot(x, w_ref[...].astype(cd),
                    preferred_element_type=jnp.float32)
        return (y + b_ref[...]).reshape(tb, s_len, d_model)

    qp = proj(q_ref, wq_ref, bq_ref)          # (TB, S, D) f32
    kp = proj(k_ref, wk_ref, bk_ref)
    vp = proj(v_ref, wv_ref, bv_ref)

    # Per-head scaled-dot-product attention, heads unrolled inside this step.
    # TODO(synk): optional attention mask (score.masked_fill(mask == 0, -10000))
    # is not implemented; this kernel covers the module's mask=None default.
    ctx_heads = []
    for h in range(n_head):
        lo, hi = h * n_d, (h + 1) * n_d
        qh = qp[:, :, lo:hi].astype(cd)        # (TB, S, n_d)
        kh = kp[:, :, lo:hi].astype(cd)
        vh = vp[:, :, lo:hi].astype(cd)

        sc = jnp.einsum('bqd,bkd->bqk', qh, kh,
                        preferred_element_type=jnp.float32) * scale
        sc = sc - jnp.max(sc, axis=-1, keepdims=True)
        p = jnp.exp(sc)
        inv_denom = pl.reciprocal(jnp.sum(p, axis=-1, keepdims=True),
                                  approx=True)
        p = p * inv_denom
        ctx_heads.append(
            jnp.einsum('bqk,bkd->bqd', p.astype(cd), vh,
                       preferred_element_type=jnp.float32))

    # Concat heads -> single (TB*S, D) @ (D, D) combine matmul.
    ctx = jnp.concatenate(ctx_heads, axis=-1).reshape(m, d_model)
    out = jnp.dot(ctx.astype(cd), wc_ref[...].astype(cd),
                  preferred_element_type=jnp.float32) + bc_ref[...]
    out_ref[...] = out.reshape(tb, s_len, d_model).astype(out_ref.dtype)


def _pick_block_batch(batch, seq, target_rows=256):
    """Batch rows per grid step: fill the MXU M dim, keep >=2 steps for v7x."""
    tb = max(1, min(batch, max(1, target_rows // max(seq, 1))))
    while batch % tb:
        tb -= 1
    if batch // tb < 2:  # keep both v7x TensorCores busy when batch allows it
        for cand in range(tb, 0, -1):
            if batch % cand == 0 and batch // cand >= 2:
                tb = cand
                break
    return tb


def _vmem_budget_bytes(tb, seq, d_model):
    """Generous estimate, capped at 48 MiB (safe on v7x's 64 MiB VMEM)."""
    w_bytes = 4 * d_model * d_model * 4 + 4 * d_model * 4
    io_bytes = 2 * 4 * tb * seq * d_model * 4        # double-buffered q/k/v/out
    tmp_bytes = 10 * tb * seq * d_model * 4          # Q/K/V/ctx intermediates
    est = w_bytes + io_bytes + tmp_bytes
    return int(min(max(4 * est, 32 * 1024 * 1024), 48 * 1024 * 1024))


def multi_head_attention(q, k, v, wq, bq, wk, bk, wv, bv, wc, bc, *,
                         n_head, block_batch=None,
                         compute_dtype=jnp.float32):
    """q, k, v: (B, S, D) f32. Weights in x @ W + b form: W (D, D), b (D,)."""
    B, S, D = q.shape
    assert D % n_head == 0
    n_d = D // n_head
    scale = 1.0 / math.sqrt(n_d)

    tb = _pick_block_batch(B, S) if block_batch is None else block_batch
    assert B % tb == 0
    grid_b = B // tb

    # Optional bf16 cast of weights in the wrapper (halves weight DMA traffic).
    wq_c = wq.astype(compute_dtype)
    wk_c = wk.astype(compute_dtype)
    wv_c = wv.astype(compute_dtype)
    wc_c = wc.astype(compute_dtype)
    bq2 = bq.reshape(1, D)
    bk2 = bk.reshape(1, D)
    bv2 = bv.reshape(1, D)
    bc2 = bc.reshape(1, D)

    row = lambda b: (b, 0, 0)        # per-batch-tile blocks
    whole = lambda b: (0, 0)         # grid-invariant (VMEM-resident) blocks

    kernel = functools.partial(_mha_kernel, n_head=n_head, scale=scale,
                               compute_dtype=compute_dtype)

    return pl.pallas_call(
        kernel,
        out_shape=jax.ShapeDtypeStruct((B, S, D), q.dtype),
        grid=(grid_b,),
        in_specs=[
            pl.BlockSpec((tb, S, D), row),       # q
            pl.BlockSpec((tb, S, D), row),       # k
            pl.BlockSpec((tb, S, D), row),       # v
            pl.BlockSpec((D, D), whole),         # W_q (resident)
            pl.BlockSpec((D, D), whole),         # W_k
            pl.BlockSpec((D, D), whole),         # W_v
            pl.BlockSpec((D, D), whole),         # W_combine
            pl.BlockSpec((1, D), whole),         # b_q
            pl.BlockSpec((1, D), whole),         # b_k
            pl.BlockSpec((1, D), whole),         # b_v
            pl.BlockSpec((1, D), whole),         # b_combine
        ],
        out_specs=pl.BlockSpec((tb, S, D), row),
        compiler_params=pltpu.CompilerParams(
            dimension_semantics=("parallel",),
            vmem_limit_bytes=_vmem_budget_bytes(tb, S, D)),
    )(q, k, v, wq_c, wk_c, wv_c, wc_c, bq2, bk2, bv2, bc2)


def _mha_reference(q, k, v, wq, bq, wk, bk, wv, bv, wc, bc, n_head):
    """Pure-JAX reference mirroring the PyTorch forward (mask=None)."""
    B, S, D = q.shape
    n_d = D // n_head
    Q = q @ wq + bq
    K = k @ wk + bk
    V = v @ wv + bv
    Qh = Q.reshape(B, S, n_head, n_d).transpose(0, 2, 1, 3)
    Kh = K.reshape(B, S, n_head, n_d).transpose(0, 2, 1, 3)
    Vh = V.reshape(B, S, n_head, n_d).transpose(0, 2, 1, 3)
    s = jnp.einsum('bhqd,bhkd->bhqk', Qh, Kh) / math.sqrt(n_d)
    p = jax.nn.softmax(s, axis=-1)
    ctx = jnp.einsum('bhqk,bhkd->bhqd', p, Vh)
    ctx = ctx.transpose(0, 2, 1, 3).reshape(B, S, D)
    return ctx @ wc + bc


if __name__ == "__main__":
    # Small shapes consistent with the module: batch=2, seq=8, d_model=128
    # (lane-dense), n_head=4 -> n_d=32.
    B, S, D, H = 2, 8, 128, 4

    key = jax.random.PRNGKey(0)
    keys = jax.random.split(key, 11)
    bound = 1.0 / math.sqrt(D)   # nn.Linear default init scale
    uni = lambda kk, shape: jax.random.uniform(kk, shape, jnp.float32, -bound, bound)

    q = jax.random.normal(keys[0], (B, S, D), jnp.float32)
    k = jax.random.normal(keys[1], (B, S, D), jnp.float32)
    v = jax.random.normal(keys[2], (B, S, D), jnp.float32)
    wq, bq = uni(keys[3], (D, D)), uni(keys[4], (D,))
    wk, bk = uni(keys[5], (D, D)), uni(keys[6], (D,))
    wv, bv = uni(keys[7], (D, D)), uni(keys[8], (D,))
    wc, bc = uni(keys[9], (D, D)), uni(keys[10], (D,))

    ref = _mha_reference(q, k, v, wq, bq, wk, bk, wv, bv, wc, bc, H)

    # f32 operand path (tight tolerance; only the approx softmax reciprocal
    # differs from exact math).
    out_f32 = multi_head_attention(q, k, v, wq, bq, wk, bk, wv, bv, wc, bc,
                                   n_head=H, compute_dtype=jnp.float32)
    out_f32 = jax.block_until_ready(out_f32)
    assert out_f32.shape == (B, S, D)
    assert jnp.allclose(out_f32, ref, atol=5e-3, rtol=5e-3), (
        "f32 path mismatch vs reference: max abs diff = "
        f"{float(jnp.max(jnp.abs(out_f32 - ref)))}")

    # bf16 MXU-operand path (f32 accumulation / softmax), looser tolerance.
    out_bf16 = multi_head_attention(q, k, v, wq, bq, wk, bk, wv, bv, wc, bc,
                                    n_head=H, compute_dtype=jnp.bfloat16)
    out_bf16 = jax.block_until_ready(out_bf16)
    assert jnp.allclose(out_bf16, ref, atol=3e-2, rtol=3e-2), (
        "bf16 path mismatch vs reference: max abs diff = "
        f"{float(jnp.max(jnp.abs(out_bf16 - ref)))}")

    print("KERNEL_OK")
</pallas_src>

<mosaic_0001>
module attributes {stable_mosaic.version = 11 : i64} {
  func.func @_mha_kernel(%arg0: i32, %arg1: memref<1x8x128xf32, #tpu.memory_space<vmem>>, %arg2: memref<1x8x128xf32, #tpu.memory_space<vmem>>, %arg3: memref<1x8x128xf32, #tpu.memory_space<vmem>>, %arg4: memref<128x128xf32, #tpu.memory_space<vmem>>, %arg5: memref<128x128xf32, #tpu.memory_space<vmem>>, %arg6: memref<128x128xf32, #tpu.memory_space<vmem>>, %arg7: memref<128x128xf32, #tpu.memory_space<vmem>>, %arg8: memref<1x128xf32, #tpu.memory_space<vmem>>, %arg9: memref<1x128xf32, #tpu.memory_space<vmem>>, %arg10: memref<1x128xf32, #tpu.memory_space<vmem>>, %arg11: memref<1x128xf32, #tpu.memory_space<vmem>>, %arg12: memref<1x8x128xf32, #tpu.memory_space<vmem>>) attributes {dimension_semantics = [#tpu.dimension_semantics<parallel>], iteration_bounds = array<i64: 2>, scalar_prefetch = 0 : i64, scratch_operands = 0 : i64, tpu.core_type = #tpu.core_type<tc>, window_params = [{transform_indices = @transform_0, window_bounds = array<i64: 1, 8, 128>}, {transform_indices = @transform_1, window_bounds = array<i64: 1, 8, 128>}, {transform_indices = @transform_2, window_bounds = array<i64: 1, 8, 128>}, {pipeline_mode = #tpu.pipeline_mode<synchronous>, transform_indices = @transform_3, window_bounds = array<i64: 128, 128>}, {pipeline_mode = #tpu.pipeline_mode<synchronous>, transform_indices = @transform_4, window_bounds = array<i64: 128, 128>}, {pipeline_mode = #tpu.pipeline_mode<synchronous>, transform_indices = @transform_5, window_bounds = array<i64: 128, 128>}, {pipeline_mode = #tpu.pipeline_mode<synchronous>, transform_indices = @transform_6, window_bounds = array<i64: 128, 128>}, {pipeline_mode = #tpu.pipeline_mode<synchronous>, transform_indices = @transform_7, window_bounds = array<i64: 1, 128>}, {pipeline_mode = #tpu.pipeline_mode<synchronous>, transform_indices = @transform_8, window_bounds = array<i64: 1, 128>}, {pipeline_mode = #tpu.pipeline_mode<synchronous>, transform_indices = @transform_9, window_bounds = array<i64: 1, 128>}, {pipeline_mode = #tpu.pipeline_mode<synchronous>, transform_indices = @transform_10, window_bounds = array<i64: 1, 128>}, {transform_indices = @transform_11, window_bounds = array<i64: 1, 8, 128>}]} {
    %c0 = arith.constant 0 : index
    %c0_0 = arith.constant 0 : index
    %c0_1 = arith.constant 0 : index
    %0 = vector.load %arg1[%c0, %c0_0, %c0_1] : memref<1x8x128xf32, #tpu.memory_space<vmem>>, vector<1x8x128xf32>
    %1 = vector.shape_cast %0 : vector<1x8x128xf32> to vector<8x128xf32>
    %c0_2 = arith.constant 0 : index
    %c0_3 = arith.constant 0 : index
    %2 = vector.load %arg4[%c0_2, %c0_3] : memref<128x128xf32, #tpu.memory_space<vmem>>, vector<128x128xf32>
    %cst = arith.constant dense<0.000000e+00> : vector<8x128xf32>
    %3 = tpu.matmul %1, %2, %cst {dimension_numbers = #tpu.dot_dimension_numbers<[1], [0], [0], [1], [0, 0, 1, 1], [], []>} : vector<8x128xf32>, vector<128x128xf32>, vector<8x128xf32> -> vector<8x128xf32>
    %c0_4 = arith.constant 0 : index
    %c0_5 = arith.constant 0 : index
    %4 = vector.load %arg8[%c0_4, %c0_5] : memref<1x128xf32, #tpu.memory_space<vmem>>, vector<1x128xf32>
    %5 = vector.broadcast %4 : vector<1x128xf32> to vector<8x128xf32>
    %6 = arith.addf %3, %5 : vector<8x128xf32>
    %7 = vector.shape_cast %6 : vector<8x128xf32> to vector<1x8x128xf32>
    %c0_6 = arith.constant 0 : index
    %c0_7 = arith.constant 0 : index
    %c0_8 = arith.constant 0 : index
    %8 = vector.load %arg2[%c0_6, %c0_7, %c0_8] : memref<1x8x128xf32, #tpu.memory_space<vmem>>, vector<1x8x128xf32>
    %9 = vector.shape_cast %8 : vector<1x8x128xf32> to vector<8x128xf32>
    %c0_9 = arith.constant 0 : index
    %c0_10 = arith.constant 0 : index
    %10 = vector.load %arg5[%c0_9, %c0_10] : memref<128x128xf32, #tpu.memory_space<vmem>>, vector<128x128xf32>
    %cst_11 = arith.constant dense<0.000000e+00> : vector<8x128xf32>
    %11 = tpu.matmul %9, %10, %cst_11 {dimension_numbers = #tpu.dot_dimension_numbers<[1], [0], [0], [1], [0, 0, 1, 1], [], []>} : vector<8x128xf32>, vector<128x128xf32>, vector<8x128xf32> -> vector<8x128xf32>
    %c0_12 = arith.constant 0 : index
    %c0_13 = arith.constant 0 : index
    %12 = vector.load %arg9[%c0_12, %c0_13] : memref<1x128xf32, #tpu.memory_space<vmem>>, vector<1x128xf32>
    %13 = vector.broadcast %12 : vector<1x128xf32> to vector<8x128xf32>
    %14 = arith.addf %11, %13 : vector<8x128xf32>
    %15 = vector.shape_cast %14 : vector<8x128xf32> to vector<1x8x128xf32>
    %c0_14 = arith.constant 0 : index
    %c0_15 = arith.constant 0 : index
    %c0_16 = arith.constant 0 : index
    %16 = vector.load %arg3[%c0_14, %c0_15, %c0_16] : memref<1x8x128xf32, #tpu.memory_space<vmem>>, vector<1x8x128xf32>
    %17 = vector.shape_cast %16 : vector<1x8x128xf32> to vector<8x128xf32>
    %c0_17 = arith.constant 0 : index
    %c0_18 = arith.constant 0 : index
    %18 = vector.load %arg6[%c0_17, %c0_18] : memref<128x128xf32, #tpu.memory_space<vmem>>, vector<128x128xf32>
    %cst_19 = arith.constant dense<0.000000e+00> : vector<8x128xf32>
    %19 = tpu.matmul %17, %18, %cst_19 {dimension_numbers = #tpu.dot_dimension_numbers<[1], [0], [0], [1], [0, 0, 1, 1], [], []>} : vector<8x128xf32>, vector<128x128xf32>, vector<8x128xf32> -> vector<8x128xf32>
    %c0_20 = arith.constant 0 : index
    %c0_21 = arith.constant 0 : index
    %20 = vector.load %arg10[%c0_20, %c0_21] : memref<1x128xf32, #tpu.memory_space<vmem>>, vector<1x128xf32>
    %21 = vector.broadcast %20 : vector<1x128xf32> to vector<8x128xf32>
    %22 = arith.addf %19, %21 : vector<8x128xf32>
    %23 = vector.shape_cast %22 : vector<8x128xf32> to vector<1x8x128xf32>
    %24 = vector.extract_strided_slice %7 {offsets = [0, 0, 0], sizes = [1, 8, 32], strides = [1, 1, 1]} : vector<1x8x128xf32> to vector<1x8x32xf32>
    %25 = vector.extract_strided_slice %15 {offsets = [0, 0, 0], sizes = [1, 8, 32], strides = [1, 1, 1]} : vector<1x8x128xf32> to vector<1x8x32xf32>
    %26 = vector.extract_strided_slice %23 {offsets = [0, 0, 0], sizes = [1, 8, 32], strides = [1, 1, 1]} : vector<1x8x128xf32> to vector<1x8x32xf32>
    "tpu.trace_start"() <{level = 10 : i32, message = "bqd,bkd->bqk"}> : () -> ()
    %cst_22 = arith.constant dense<0.000000e+00> : vector<1x8x8xf32>
    %27 = tpu.matmul %24, %25, %cst_22 {dimension_numbers = #tpu.dot_dimension_numbers<[2], [2], [1], [1], [0, 0, 0, 1, 1, 1], [0], [0]>} : vector<1x8x32xf32>, vector<1x8x32xf32>, vector<1x8x8xf32> -> vector<1x8x8xf32>
    "tpu.trace_stop"() : () -> ()
    %cst_23 = arith.constant 0.176776692 : f32
    %28 = vector.broadcast %cst_23 : f32 to vector<1x8x8xf32>
    %29 = arith.mulf %27, %28 : vector<1x8x8xf32>
    %cst_24 = arith.constant dense<0xFF800000> : vector<1x8xf32>
    %30 = vector.multi_reduction <maximumf>, %29, %cst_24 [2] : vector<1x8x8xf32> to vector<1x8xf32>
    %31 = vector.shape_cast %30 : vector<1x8xf32> to vector<1x8x1xf32>
    %32 = vector.broadcast %31 : vector<1x8x1xf32> to vector<1x8x8xf32>
    %33 = arith.subf %29, %32 : vector<1x8x8xf32>
    %34 = math.exp %33 : vector<1x8x8xf32>
    %cst_25 = arith.constant dense<0.000000e+00> : vector<1x8xf32>
    %35 = vector.multi_reduction <add>, %34, %cst_25 [2] : vector<1x8x8xf32> to vector<1x8xf32>
    %36 = vector.shape_cast %35 : vector<1x8xf32> to vector<1x8x1xf32>
    %37 = tpu.reciprocal %36 {approx = true} : vector<1x8x1xf32> -> vector<1x8x1xf32>
    %38 = vector.broadcast %37 : vector<1x8x1xf32> to vector<1x8x8xf32>
    %39 = arith.mulf %34, %38 : vector<1x8x8xf32>
    "tpu.trace_start"() <{level = 10 : i32, message = "bqk,bkd->bqd"}> : () -> ()
    %cst_26 = arith.constant dense<0.000000e+00> : vector<1x8x32xf32>
    %40 = tpu.matmul %39, %26, %cst_26 {dimension_numbers = #tpu.dot_dimension_numbers<[2], [1], [1], [2], [0, 0, 0, 1, 1, 2], [0], [0]>} : vector<1x8x8xf32>, vector<1x8x32xf32>, vector<1x8x32xf32> -> vector<1x8x32xf32>
    "tpu.trace_stop"() : () -> ()
    %41 = vector.extract_strided_slice %7 {offsets = [0, 0, 32], sizes = [1, 8, 32], strides = [1, 1, 1]} : vector<1x8x128xf32> to vector<1x8x32xf32>
    %42 = vector.extract_strided_slice %15 {offsets = [0, 0, 32], sizes = [1, 8, 32], strides = [1, 1, 1]} : vector<1x8x128xf32> to vector<1x8x32xf32>
    %43 = vector.extract_strided_slice %23 {offsets = [0, 0, 32], sizes = [1, 8, 32], strides = [1, 1, 1]} : vector<1x8x128xf32> to vector<1x8x32xf32>
    "tpu.trace_start"() <{level = 10 : i32, message = "bqd,bkd->bqk"}> : () -> ()
    %cst_27 = arith.constant dense<0.000000e+00> : vector<1x8x8xf32>
    %44 = tpu.matmul %41, %42, %cst_27 {dimension_numbers = #tpu.dot_dimension_numbers<[2], [2], [1], [1], [0, 0, 0, 1, 1, 1], [0], [0]>} : vector<1x8x32xf32>, vector<1x8x32xf32>, vector<1x8x8xf32> -> vector<1x8x8xf32>
    "tpu.trace_stop"() : () -> ()
    %cst_28 = arith.constant 0.176776692 : f32
    %45 = vector.broadcast %cst_28 : f32 to vector<1x8x8xf32>
    %46 = arith.mulf %44, %45 : vector<1x8x8xf32>
    %cst_29 = arith.constant dense<0xFF800000> : vector<1x8xf32>
    %47 = vector.multi_reduction <maximumf>, %46, %cst_29 [2] : vector<1x8x8xf32> to vector<1x8xf32>
    %48 = vector.shape_cast %47 : vector<1x8xf32> to vector<1x8x1xf32>
    %49 = vector.broadcast %48 : vector<1x8x1xf32> to vector<1x8x8xf32>
    %50 = arith.subf %46, %49 : vector<1x8x8xf32>
    %51 = math.exp %50 : vector<1x8x8xf32>
    %cst_30 = arith.constant dense<0.000000e+00> : vector<1x8xf32>
    %52 = vector.multi_reduction <add>, %51, %cst_30 [2] : vector<1x8x8xf32> to vector<1x8xf32>
    %53 = vector.shape_cast %52 : vector<1x8xf32> to vector<1x8x1xf32>
    %54 = tpu.reciprocal %53 {approx = true} : vector<1x8x1xf32> -> vector<1x8x1xf32>
    %55 = vector.broadcast %54 : vector<1x8x1xf32> to vector<1x8x8xf32>
    %56 = arith.mulf %51, %55 : vector<1x8x8xf32>
    "tpu.trace_start"() <{level = 10 : i32, message = "bqk,bkd->bqd"}> : () -> ()
    %cst_31 = arith.constant dense<0.000000e+00> : vector<1x8x32xf32>
    %57 = tpu.matmul %56, %43, %cst_31 {dimension_numbers = #tpu.dot_dimension_numbers<[2], [1], [1], [2], [0, 0, 0, 1, 1, 2], [0], [0]>} : vector<1x8x8xf32>, vector<1x8x32xf32>, vector<1x8x32xf32> -> vector<1x8x32xf32>
    "tpu.trace_stop"() : () -> ()
    %58 = vector.extract_strided_slice %7 {offsets = [0, 0, 64], sizes = [1, 8, 32], strides = [1, 1, 1]} : vector<1x8x128xf32> to vector<1x8x32xf32>
    %59 = vector.extract_strided_slice %15 {offsets = [0, 0, 64], sizes = [1, 8, 32], strides = [1, 1, 1]} : vector<1x8x128xf32> to vector<1x8x32xf32>
    %60 = vector.extract_strided_slice %23 {offsets = [0, 0, 64], sizes = [1, 8, 32], strides = [1, 1, 1]} : vector<1x8x128xf32> to vector<1x8x32xf32>
    "tpu.trace_start"() <{level = 10 : i32, message = "bqd,bkd->bqk"}> : () -> ()
    %cst_32 = arith.constant dense<0.000000e+00> : vector<1x8x8xf32>
    %61 = tpu.matmul %58, %59, %cst_32 {dimension_numbers = #tpu.dot_dimension_numbers<[2], [2], [1], [1], [0, 0, 0, 1, 1, 1], [0], [0]>} : vector<1x8x32xf32>, vector<1x8x32xf32>, vector<1x8x8xf32> -> vector<1x8x8xf32>
    "tpu.trace_stop"() : () -> ()
    %cst_33 = arith.constant 0.176776692 : f32
    %62 = vector.broadcast %cst_33 : f32 to vector<1x8x8xf32>
    %63 = arith.mulf %61, %62 : vector<1x8x8xf32>
    %cst_34 = arith.constant dense<0xFF800000> : vector<1x8xf32>
    %64 = vector.multi_reduction <maximumf>, %63, %cst_34 [2] : vector<1x8x8xf32> to vector<1x8xf32>
    %65 = vector.shape_cast %64 : vector<1x8xf32> to vector<1x8x1xf32>
    %66 = vector.broadcast %65 : vector<1x8x1xf32> to vector<1x8x8xf32>
    %67 = arith.subf %63, %66 : vector<1x8x8xf32>
    %68 = math.exp %67 : vector<1x8x8xf32>
    %cst_35 = arith.constant dense<0.000000e+00> : vector<1x8xf32>
    %69 = vector.multi_reduction <add>, %68, %cst_35 [2] : vector<1x8x8xf32> to vector<1x8xf32>
    %70 = vector.shape_cast %69 : vector<1x8xf32> to vector<1x8x1xf32>
    %71 = tpu.reciprocal %70 {approx = true} : vector<1x8x1xf32> -> vector<1x8x1xf32>
    %72 = vector.broadcast %71 : vector<1x8x1xf32> to vector<1x8x8xf32>
    %73 = arith.mulf %68, %72 : vector<1x8x8xf32>
    "tpu.trace_start"() <{level = 10 : i32, message = "bqk,bkd->bqd"}> : () -> ()
    %cst_36 = arith.constant dense<0.000000e+00> : vector<1x8x32xf32>
    %74 = tpu.matmul %73, %60, %cst_36 {dimension_numbers = #tpu.dot_dimension_numbers<[2], [1], [1], [2], [0, 0, 0, 1, 1, 2], [0], [0]>} : vector<1x8x8xf32>, vector<1x8x32xf32>, vector<1x8x32xf32> -> vector<1x8x32xf32>
    "tpu.trace_stop"() : () -> ()
    %75 = vector.extract_strided_slice %7 {offsets = [0, 0, 96], sizes = [1, 8, 32], strides = [1, 1, 1]} : vector<1x8x128xf32> to vector<1x8x32xf32>
    %76 = vector.extract_strided_slice %15 {offsets = [0, 0, 96], sizes = [1, 8, 32], strides = [1, 1, 1]} : vector<1x8x128xf32> to vector<1x8x32xf32>
    %77 = vector.extract_strided_slice %23 {offsets = [0, 0, 96], sizes = [1, 8, 32], strides = [1, 1, 1]} : vector<1x8x128xf32> to vector<1x8x32xf32>
    "tpu.trace_start"() <{level = 10 : i32, message = "bqd,bkd->bqk"}> : () -> ()
    %cst_37 = arith.constant dense<0.000000e+00> : vector<1x8x8xf32>
    %78 = tpu.matmul %75, %76, %cst_37 {dimension_numbers = #tpu.dot_dimension_numbers<[2], [2], [1], [1], [0, 0, 0, 1, 1, 1], [0], [0]>} : vector<1x8x32xf32>, vector<1x8x32xf32>, vector<1x8x8xf32> -> vector<1x8x8xf32>
    "tpu.trace_stop"() : () -> ()
    %cst_38 = arith.constant 0.176776692 : f32
    %79 = vector.broadcast %cst_38 : f32 to vector<1x8x8xf32>
    %80 = arith.mulf %78, %79 : vector<1x8x8xf32>
    %cst_39 = arith.constant dense<0xFF800000> : vector<1x8xf32>
    %81 = vector.multi_reduction <maximumf>, %80, %cst_39 [2] : vector<1x8x8xf32> to vector<1x8xf32>
    %82 = vector.shape_cast %81 : vector<1x8xf32> to vector<1x8x1xf32>
    %83 = vector.broadcast %82 : vector<1x8x1xf32> to vector<1x8x8xf32>
    %84 = arith.subf %80, %83 : vector<1x8x8xf32>
    %85 = math.exp %84 : vector<1x8x8xf32>
    %cst_40 = arith.constant dense<0.000000e+00> : vector<1x8xf32>
    %86 = vector.multi_reduction <add>, %85, %cst_40 [2] : vector<1x8x8xf32> to vector<1x8xf32>
    %87 = vector.shape_cast %86 : vector<1x8xf32> to vector<1x8x1xf32>
    %88 = tpu.reciprocal %87 {approx = true} : vector<1x8x1xf32> -> vector<1x8x1xf32>
    %89 = vector.broadcast %88 : vector<1x8x1xf32> to vector<1x8x8xf32>
    %90 = arith.mulf %85, %89 : vector<1x8x8xf32>
    "tpu.trace_start"() <{level = 10 : i32, message = "bqk,bkd->bqd"}> : () -> ()
    %cst_41 = arith.constant dense<0.000000e+00> : vector<1x8x32xf32>
    %91 = tpu.matmul %90, %77, %cst_41 {dimension_numbers = #tpu.dot_dimension_numbers<[2], [1], [1], [2], [0, 0, 0, 1, 1, 2], [0], [0]>} : vector<1x8x8xf32>, vector<1x8x32xf32>, vector<1x8x32xf32> -> vector<1x8x32xf32>
    "tpu.trace_stop"() : () -> ()
    %92 = tpu.concatenate %40, %57, %74, %91 in 2 : vector<1x8x32xf32>, vector<1x8x32xf32>, vector<1x8x32xf32>, vector<1x8x32xf32> -> vector<1x8x128xf32>
    %93 = vector.shape_cast %92 : vector<1x8x128xf32> to vector<8x128xf32>
    %c0_42 = arith.constant 0 : index
    %c0_43 = arith.constant 0 : index
    %94 = vector.load %arg7[%c0_42, %c0_43] : memref<128x128xf32, #tpu.memory_space<vmem>>, vector<128x128xf32>
    %cst_44 = arith.constant dense<0.000000e+00> : vector<8x128xf32>
    %95 = tpu.matmul %93, %94, %cst_44 {dimension_numbers = #tpu.dot_dimension_numbers<[1], [0], [0], [1], [0, 0, 1, 1], [], []>} : vector<8x128xf32>, vector<128x128xf32>, vector<8x128xf32> -> vector<8x128xf32>
    %c0_45 = arith.constant 0 : index
    %c0_46 = arith.constant 0 : index
    %96 = vector.load %arg11[%c0_45, %c0_46] : memref<1x128xf32, #tpu.memory_space<vmem>>, vector<1x128xf32>
    %97 = vector.broadcast %96 : vector<1x128xf32> to vector<8x128xf32>
    %98 = arith.addf %95, %97 : vector<8x128xf32>
    %99 = vector.shape_cast %98 : vector<8x128xf32> to vector<1x8x128xf32>
    %c0_47 = arith.constant 0 : index
    %c0_48 = arith.constant 0 : index
    %c0_49 = arith.constant 0 : index
    %100 = vector.load %arg12[%c0_47, %c0_48, %c0_49] : memref<1x8x128xf32, #tpu.memory_space<vmem>>, vector<1x8x128xf32>
    tpu.vector_store %arg12[%c0_47, %c0_48, %c0_49], %99 {strides = array<i32>} : memref<1x8x128xf32, #tpu.memory_space<vmem>>, vector<1x8x128xf32>,
    return
  }
  func.func @transform_0(%arg0: i32) -> (i32, i32, i32) {
    %c0_i32 = arith.constant 0 : i32
    %c0_i32_0 = arith.constant 0 : i32
    %c0_i32_1 = arith.constant 0 : i32
    return %arg0, %c0_i32, %c0_i32_0 : i32, i32, i32
  }
  func.func @transform_1(%arg0: i32) -> (i32, i32, i32) {
    %c0_i32 = arith.constant 0 : i32
    %c0_i32_0 = arith.constant 0 : i32
    %c0_i32_1 = arith.constant 0 : i32
    return %arg0, %c0_i32, %c0_i32_0 : i32, i32, i32
  }
  func.func @transform_2(%arg0: i32) -> (i32, i32, i32) {
    %c0_i32 = arith.constant 0 : i32
    %c0_i32_0 = arith.constant 0 : i32
    %c0_i32_1 = arith.constant 0 : i32
    return %arg0, %c0_i32, %c0_i32_0 : i32, i32, i32
  }
  func.func @transform_3(%arg0: i32) -> (i32, i32) {
    %c0_i32 = arith.constant 0 : i32
    %c0_i32_0 = arith.constant 0 : i32
    %c0_i32_1 = arith.constant 0 : i32
    return %c0_i32, %c0_i32_0 : i32, i32
  }
  func.func @transform_4(%arg0: i32) -> (i32, i32) {
    %c0_i32 = arith.constant 0 : i32
    %c0_i32_0 = arith.constant 0 : i32
    %c0_i32_1 = arith.constant 0 : i32
    return %c0_i32, %c0_i32_0 : i32, i32
  }
  func.func @transform_5(%arg0: i32) -> (i32, i32) {
    %c0_i32 = arith.constant 0 : i32
    %c0_i32_0 = arith.constant 0 : i32
    %c0_i32_1 = arith.constant 0 : i32
    return %c0_i32, %c0_i32_0 : i32, i32
  }
  func.func @transform_6(%arg0: i32) -> (i32, i32) {
    %c0_i32 = arith.constant 0 : i32
    %c0_i32_0 = arith.constant 0 : i32
    %c0_i32_1 = arith.constant 0 : i32
    return %c0_i32, %c0_i32_0 : i32, i32
  }
  func.func @transform_7(%arg0: i32) -> (i32, i32) {
    %c0_i32 = arith.constant 0 : i32
    %c0_i32_0 = arith.constant 0 : i32
    %c0_i32_1 = arith.constant 0 : i32
    return %c0_i32, %c0_i32_0 : i32, i32
  }
  func.func @transform_8(%arg0: i32) -> (i32, i32) {
    %c0_i32 = arith.constant 0 : i32
    %c0_i32_0 = arith.constant 0 : i32
    %c0_i32_1 = arith.constant 0 : i32
    return %c0_i32, %c0_i32_0 : i32, i32
  }
  func.func @transform_9(%arg0: i32) -> (i32, i32) {
    %c0_i32 = arith.constant 0 : i32
    %c0_i32_0 = arith.constant 0 : i32
    %c0_i32_1 = arith.constant 0 : i32
    return %c0_i32, %c0_i32_0 : i32, i32
  }
  func.func @transform_10(%arg0: i32) -> (i32, i32) {
    %c0_i32 = arith.constant 0 : i32
    %c0_i32_0 = arith.constant 0 : i32
    %c0_i32_1 = arith.constant 0 : i32
    return %c0_i32, %c0_i32_0 : i32, i32
  }
  func.func @transform_11(%arg0: i32) -> (i32, i32, i32) {
    %c0_i32 = arith.constant 0 : i32
    %c0_i32_0 = arith.constant 0 : i32
    %c0_i32_1 = arith.constant 0 : i32
    return %arg0, %c0_i32, %c0_i32_0 : i32, i32, i32
  }
}

</mosaic_0001>

<bundles_post_ra>
// kernel: tpu_custom_call.1
= control target key start
LH: loop header
LB: loop body
LE: loop exit
PB: predicated region body
PF: predicated region fallthrough
CT: control target
= control target key end

     0   :  { %s3126_s0 = inlined_call_operand.hbm [shape: f32[2,8,128], index: 0, kind: input, shape index: {}]   ;;  %s3127_s1 = inlined_call_operand.hbm [shape: f32[2,8,128], index: 1, kind: input, shape index: {}]   ;;  %s3128_s2 = inlined_call_operand.hbm [shape: f32[2,8,128], index: 2, kind: input, shape index: {}]   ;;  %s3129_s3 = inlined_call_operand.hbm [shape: f32[128,128], index: 3, kind: input, shape index: {}]   ;;  %s3130_s4 = inlined_call_operand.hbm [shape: f32[128,128], index: 4, kind: input, shape index: {}]   ;;  %s3131_s5 = inlined_call_operand.hbm [shape: f32[128,128], index: 5, kind: input, shape index: {}]   ;;  %s3132_s6 = inlined_call_operand.hbm [shape: f32[128,128], index: 6, kind: input, shape index: {}]   ;;  %s3133_s7 = inlined_call_operand.vmem [shape: f32[1,128], index: 7, kind: input, shape index: {}]   ;;  %s3134_s8 = inlined_call_operand.vmem [shape: f32[1,128], index: 8, kind: input, shape index: {}]   ;;  %s3135_s9 = inlined_call_operand.vmem [shape: f32[1,128], index: 9, kind: input, shape index: {}]   ;;  %s3136_s10 = inlined_call_operand.vmem [shape: f32[1,128], index: 10, kind: input, shape index: {}]   ;;  %s3137_s11 = inlined_call_operand.hbm [shape: f32[2,8,128], index: 11, kind: output, shape index: {}]  }
   0x1   :  { %3163 = sst [smem:[#allocation26_spill]] %s3127_s1 }
   0x2   :  { %3164 = sst [smem:[#allocation27_spill]] %s3129_s3 }
   0x3   :  { %3165 = sst [smem:[#allocation28_spill]] %s3131_s5 }
   0x4   :  { %3166 = sst [smem:[#allocation29_spill]] %s3133_s7 }
   0x5   :  { %3167 = sst [smem:[#allocation30_spill]] %s3135_s9 }
   0x6   :  { %3168 = sst [smem:[#allocation31_spill]] %s3136_s10 }
   0x7   :  { %3169 = sst [smem:[#allocation32_spill]] %s3137_s11 }
   0x8   :  { %16 = vsyncpa [#allocation3], 0 }
   0x9   :  { %18 = vsyncpa [#allocation3 + $0x1], 0 }
   0xa   :  { %19 = vsyncpa [#allocation6], 0 }
   0xb   :  { %21 = vsyncpa [#allocation6 + $0x1], 0 }
   0xc   :  { %22 = vsyncpa [#allocation9], 0 }
   0xd   :  { %23 = vsyncpa [#allocation12], 0 }
   0xe   :  { %24 = vsyncpa [#allocation4], 0 }
   0xf   :  { %26 = vsyncpa [#allocation4 + $0x1], 0  ;;  %s2632_s17 = smov 0   ;;  %s2634_s18 = smov 0  }
  0x10   :  { %s2636_s19 = smov 0   ;;  %s2638_s20 = smov 0  }
  0x11 LB: > { %3170 = sst [smem:[#allocation20_spill]] %s2542_s17  ;;  %s2556_s21 = smov [#allocation8]   ;;  %s2554_s20 = sphi %s2638_s20, %s3212_s20   ;;  %s2550_s19 = sphi %s2636_s19, %s3216_s19   ;;  %s2546_s18 = sphi %s2634_s18, %s3215_s18   ;;  %s2542_s17 = sphi %s2632_s17, %s3214_s17  }
  0x12   : > { %3171 = sst [smem:[#allocation21_spill]] %s2554_s20  ;;  %s321_s22 = sshll.u32 %s2556_s21, 4  ;;  %s2658_s22 = int_to_ptr.vmem [resolvable:$true] %s321_s22 }
  0x13   : > { %s2653_s23 = sadd.s32 4294967295, %s2554_s20   ;;  %p1752_p0 = scmp.ge.s32.totalorder %s2554_s20, 1 }
  0x14   : > { %p3150_p1 = scmp.eq.s32.totalorder %s2653_s23, 0  ;;  %p309_p2 = scmp.lt.s32.totalorder %s2554_s20, 3 }
  0x15   : > { %s2557_s25 = smov [#allocation11]   ;;  %s3174_s3 = sld [smem:[#allocation27_spill]] }
  0x16   : > { %p2660_p3 = pnand %p1752_p0, %p309_p2  ;;  %s347_s26 = sshll.u32 %s2557_s25, 4  ;;  %s2673_s26 = int_to_ptr.vmem [resolvable:$true] %s347_s26 }
  0x18   : > { %s3172_s24 = scalar_select %p2660_p3, 1, 0 }
  0x19   : > { %p2177_p5 = pneg %p2660_p3 }
  0x1b   : > { %p2669_p6 = pnand %p2177_p5, %p3150_p1  ;;  %s2274_s30 = scalar_lea.hbm %s3174_s3, 2048 }
  0x1c   : > { %p2275_p7 = scmp.ne.s32.totalorder %s3174_s3, %s2274_s30  ;;  %p2281_p11 = scmp.lt.u32.totalorder %s2274_s30, %s3174_s3 }
  0x1d   : > { %s3173_s27 = scalar_select %p2669_p6, 1, 0 }
  0x1e   : > { %p2683_p8 = pneg %p2669_p6 }
  0x20   : > { %s3175_s14 = scalar_select %p2683_p8, 1, 0 }
  0x21   : > { %p2277_p9 = pnand %p2683_p8, %p2275_p7 }
  0x23   : > { %p2278_p10 = pneg %p2277_p9 }
  0x25   : > { %p2283_p12 = pnand %p2281_p11, %p2278_p10 }
  0x27   : > { %2286 = shalt.err (!%p2283_p12)
}
  0x28   : > { %s2287_s21 = scalar_lea.vmem %s2658_s22, 2048  ;;  %p2295_p5 = scmp.lt.s32.totalorder %s2658_s22, %s2658_s22 }
  0x29   : > { %p2288_p13 = scmp.ne.s32.totalorder %s2658_s22, %s2287_s21  ;;  %p2296_p4 = scmp.lt.s32.totalorder %s2287_s21, %s2287_s21 }
  0x2b   : > { %p2290_p0 = pnand %p2288_p13, %p2683_p8  ;;  %p2297_p7 = por %p2296_p4, %p2295_p5 }
  0x2d   : > { %p2291_p2 = pneg %p2290_p0 }
  0x2f   : > { %p2298_p9 = pnand %p2297_p7, %p2291_p2 }
  0x31   : > { %2301 = shalt.err (!%p2298_p9)
}
  0x32   : > { %s3140_s25 = smov 128   ;;  %s3142_s28 = smov 8  }
  0x33   : > { %2180 = dma.hbm_to_vmem [thread:$0]  (!%p2669_p6), %s3174_s3, 2048, %s2658_s22, [#allocation9], %s3140_s25, %s3140_s25, %s3142_s28  }
  0x34   : > { %s3176_s5 = sld [smem:[#allocation28_spill]] }
  0x3a   : > { %s2302_s15 = scalar_lea.hbm %s3176_s5, 2048 }
  0x3b   : > { %p2303_p4 = scmp.ne.s32.totalorder %s3176_s5, %s2302_s15  ;;  %p2309_p12 = scmp.lt.u32.totalorder %s2302_s15, %s3176_s5 }
  0x3d   : > { %p2305_p10 = pnand %p2303_p4, %p2683_p8 }
  0x3f   : > { %p2306_p11 = pneg %p2305_p10 }
  0x41   : > { %p2311_p13 = pnand %p2309_p12, %p2306_p11 }
  0x43   : > { %2314 = shalt.err (!%p2311_p13)
}
  0x44   : > { %s2315_s22 = scalar_lea.vmem %s2673_s26, 2048  ;;  %p2323_p7 = scmp.lt.s32.totalorder %s2673_s26, %s2673_s26 }
  0x45   : > { %p2316_p0 = scmp.ne.s32.totalorder %s2673_s26, %s2315_s22  ;;  %p2324_p9 = scmp.lt.s32.totalorder %s2315_s22, %s2315_s22 }
  0x47   : > { %p2318_p2 = pnand %p2316_p0, %p2683_p8  ;;  %p2325_p4 = por %p2324_p9, %p2323_p7 }
  0x49   : > { %p2319_p5 = pneg %p2318_p2 }
  0x4b   : > { %p2326_p10 = pnand %p2325_p4, %p2319_p5 }
  0x4d   : > { %2329 = shalt.err (!%p2326_p10)
}
  0x4e   : > { %2186 = dma.hbm_to_vmem [thread:$0]  (!%p2669_p6), %s3176_s5, 2048, %s2673_s26, [#allocation12], %s3140_s25, %s3140_s25, %s3142_s28  }
  0x4f   : > { %s1751_s29 = sadd.s32 4294967294, %s2554_s20   ;;  %s2735_s30 = sadd.s32 1, %s2554_s20  }
  0x50   : > { %3177 = sst [smem:[#allocation22_spill]] %s2735_s30  ;;  %s36_s12 = ssub.s32 %s2554_s20, %s2735_s30 }
  0x51   : > { %s39_s13 = sadd.s32 1, %s2550_s19  ;;  %p37_p11 = scmp.eq.s32.totalorder %s36_s12, 0 }
  0x52   : > { %p46_p12 = scmp.ne.s32.totalorder %s2550_s19, %s2546_s18  ;;  %p47_p13 = scmp.eq.s32.totalorder %s2554_s20, 0 }
  0x53   : > { %p52_p0 = scmp.ne.s32.totalorder %s2546_s18, %s2542_s17  ;;  %p296_p7 = scmp.eq.s32.totalorder %s2653_s23, 1 }
  0x54   : > { %s2746_s15 = scalar_select %p37_p11, %s2550_s19, %s39_s13  }
  0x55   : > { %p48_p2 = por %p47_p13, %p46_p12  ;;  %p2750_p5 = por %p3150_p1, %p52_p0 }
  0x56   : > { %3178 = sst [smem:[#allocation23_spill]] %s2746_s15  ;;  %p302_p9 = scmp.eq.s32.totalorder %s1751_s29, 1 }
  0x57   : > { %s3179_s16 = scalar_select %p2750_p5, 1, 0 }
  0x58   : > { %p2208_p4 = scmp.lt.s32.totalorder %s2554_s20, 2  ;;  %s3144_s26 = sand.u32 1, %s2550_s19  }
  0x59   : > { %p2757_p10 = por %p296_p7, %p46_p12  ;;  %p2761_p3 = por %p302_p9, %p52_p0 }
  0x5a   : > { %s2767_s10 = sshll.u32 %s3144_s26, 3  ;;  %s2770_s11 = sshll.u32 %s2554_s20, 7 }
  0x5b   : > { %s3180_s21 = scalar_select %p2757_p10, 1, 0 }
  0x5c   : > { %s3182_s22 = scalar_select %p2761_p3, 1, 0 }
  0x5d   : > { %3181 = sst [smem:[#allocation24_spill]] %s3180_s21  ;;  %p2772_p11 = pnand %p2208_p4, %p48_p2 }
  0x5e   : > { %3183 = sst [smem:[#allocation25_spill]] %s3182_s22  ;;  %s404_s29 = sand.u32 1, %s2554_s20  }
  0x5f   : > { %s3184_s12 = scalar_select %p2772_p11, 1, 0 }
  0x60   : > { %s3185_s1 = sld [smem:[#allocation26_spill]]  ;;  %s408_s26 = scalar_lea.vmem [#allocation5], %s2767_s10 }
  0x61   : > { %s415_s3 = sshll.u32 %s408_s26, 4  ;;  %s2560_s5 = smov [#allocation10]   ;;  %s2784_s3 = int_to_ptr.vmem [resolvable:$true] %s415_s3 }
  0x62   : > { %s2786_s15 = sshll.u32 %s2560_s5, 4  ;;  %s2788_s30 = scalar_lea.sflag [#allocation6], %s404_s29  ;;  %s335_s15 = int_to_ptr.vmem [resolvable:$true] %s2786_s15 }
  0x63   : > { %p2794_p13 = pneg %p2772_p11 }
  0x65   : > { %s3186_s25 = scalar_select %p2794_p13, 1, 0 }
  0x66   : > { %s2781_s28 = scalar_lea.hbm %s3185_s1, %s2770_s11  ;;  %s2335_s20 = scalar_lea.hbm %s3185_s1, 256 }
  0x67   : > { %s2330_s22 = scalar_lea.hbm %s2781_s28, 128  ;;  %p2336_p7 = scmp.lt.u32.totalorder %s2781_s28, %s3185_s1 }
  0x68   : > { %p2331_p12 = scmp.ne.s32.totalorder %s2781_s28, %s2330_s22  ;;  %p2337_p9 = scmp.lt.u32.totalorder %s2335_s20, %s2330_s22 }
  0x69   : > { %p2339_p1 = scmp.lt.u32.totalorder %s2330_s22, %s2781_s28 }
  0x6a   : > { %p2333_p0 = pnand %p2794_p13, %p2331_p12  ;;  %p2338_p4 = por %p2337_p9, %p2336_p7 }
  0x6c   : > { %p2334_p2 = pneg %p2333_p0  ;;  %p2340_p3 = por %p2339_p1, %p2338_p4 }
  0x6e   : > { %p2341_p10 = pnand %p2340_p3, %p2334_p2 }
  0x70   : > { %2344 = shalt.err (!%p2341_p10)
}
  0x71   : > { %s2345_s29 = scalar_lea.vmem %s2784_s3, 128  ;;  %s2561_s13 = smov [#allocation5]  }
  0x72   : > { %p2346_p12 = scmp.ne.s32.totalorder %s2784_s3, %s2345_s29  ;;  %s2350_s26 = sshll.u32 %s2561_s13, 4  ;;  %s2351_s26 = int_to_ptr.vmem [resolvable:$false] %s2350_s26 }
  0x73   : > { %s2352_s17 = scalar_lea.vmem %s2351_s26, 256  ;;  %p2353_p6 = scmp.lt.s32.totalorder %s2784_s3, %s2351_s26 }
  0x74   : > { %p2348_p0 = pnand %p2346_p12, %p2794_p13  ;;  %p2354_p8 = scmp.lt.s32.totalorder %s2352_s17, %s2345_s29 }
  0x76   : > { %p2349_p5 = pneg %p2348_p0  ;;  %p2355_p7 = por %p2354_p8, %p2353_p6 }
  0x78   : > { %p2356_p9 = pnand %p2355_p7, %p2349_p5 }
  0x7a   : > { %2359 = shalt.err (!%p2356_p9)
}
  0x7b   : > { %2196 = dma.hbm_to_vmem [thread:$0]  (!%p2772_p11), %s2781_s28, 128, %s2784_s3, %s2788_s30  }
  0x7c   : > { %s2360_s5 = scalar_lea.hbm %s3130_s4, 2048  ;;  %p3187_p3 = scmp.ne.s32.totalorder %s3175_s14, 0 }
  0x7d   : > { %p2361_p1 = scmp.ne.s32.totalorder %s3130_s4, %s2360_s5  ;;  %p2367_p5 = scmp.lt.u32.totalorder %s2360_s5, %s3130_s4 }
  0x7f   : > { %p2363_p6 = pnand %p2361_p1, %p3187_p3 }
  0x81   : > { %p2364_p8 = pneg %p2363_p6 }
  0x83   : > { %p2369_p10 = pnand %p2367_p5, %p2364_p8 }
  0x85   : > { %2372 = shalt.err (!%p2369_p10)
}
  0x86   : > { %s2373_s17 = scalar_lea.vmem %s335_s15, 2048  ;;  %p2381_p0 = scmp.lt.s32.totalorder %s335_s15, %s335_s15 }
  0x87   : > { %p2374_p2 = scmp.ne.s32.totalorder %s335_s15, %s2373_s17  ;;  %p2382_p7 = scmp.lt.s32.totalorder %s2373_s17, %s2373_s17 }
  0x89   : > { %p2376_p4 = pnand %p2374_p2, %p3187_p3  ;;  %p2383_p9 = por %p2382_p7, %p2381_p0 }
  0x8b   : > { %p2377_p12 = pneg %p2376_p4 }
  0x8d   : > { %p2384_p11 = pnand %p2383_p9, %p2377_p12 }
  0x8f   : > { %2387 = shalt.err (!%p2384_p11)
}
  0x90   : > { %p3188_p1 = scmp.ne.s32.totalorder %s3173_s27, 0  ;;  %s3189_s1 = smov 8  }
  0x91   : > { %s3190_s3 = smov 128   ;;  %s2562_s22 = smov [#allocation13]  }
  0x92   : > { %2183 = dma.hbm_to_vmem [thread:$0]  (!%p3188_p1), %s3130_s4, 2048, %s335_s15, [#allocation9], %s3190_s3, %s3190_s3, %s3189_s1  }
  0x93   : > { %s360_s5 = sshll.u32 %s2562_s22, 4  ;;  %s2388_s26 = scalar_lea.hbm %s3132_s6, 2048  ;;  %s361_s5 = int_to_ptr.vmem [resolvable:$true] %s360_s5 }
  0x94   : > { %p2389_p11 = scmp.ne.s32.totalorder %s3132_s6, %s2388_s26  ;;  %p2395_p5 = scmp.lt.u32.totalorder %s2388_s26, %s3132_s6 }
  0x96   : > { %p2391_p6 = pnand %p2389_p11, %p3187_p3 }
  0x98   : > { %p2392_p8 = pneg %p2391_p6 }
  0x9a   : > { %p2397_p10 = pnand %p2395_p5, %p2392_p8 }
  0x9c   : > { %2400 = shalt.err (!%p2397_p10)
}
  0x9d   : > { %s2401_s15 = scalar_lea.vmem %s361_s5, 2048  ;;  %p2409_p0 = scmp.lt.s32.totalorder %s361_s5, %s361_s5 }
  0x9e   : > { %p2402_p2 = scmp.ne.s32.totalorder %s361_s5, %s2401_s15  ;;  %p2410_p7 = scmp.lt.s32.totalorder %s2401_s15, %s2401_s15 }
  0xa0   : > { %p2404_p4 = pnand %p2402_p2, %p3187_p3  ;;  %p2411_p9 = por %p2410_p7, %p2409_p0 }
  0xa2   : > { %p2405_p12 = pneg %p2404_p4 }
  0xa4   : > { %p2412_p13 = pnand %p2411_p9, %p2405_p12 }
  0xa6   : > { %2415 = shalt.err (!%p2412_p13)
}
  0xa7   : > { %2189 = dma.hbm_to_vmem [thread:$0]  (!%p3188_p1), %s3132_s6, 2048, %s361_s5, [#allocation12], %s3190_s3, %s3190_s3, %s3189_s1  }
  0xa8   : > { %s2865_s28 = scalar_lea.hbm %s3126_s0, %s2770_s11  ;;  %s390_s27 = scalar_lea.vmem [#allocation2], %s2767_s10 }
  0xa9   : > { %s397_s20 = sshll.u32 %s390_s27, 4  ;;  %s3191_s22 = sand.u32 1, %s2550_s19   ;;  %s398_s20 = int_to_ptr.vmem [resolvable:$true] %s397_s20 }
  0xaa   : > { %s387_s13 = scalar_lea.sflag [#allocation3], %s3191_s22  ;;  %s2416_s29 = scalar_lea.hbm %s2865_s28, 128 }
  0xab   : > { %p2417_p13 = scmp.ne.s32.totalorder %s2865_s28, %s2416_s29  ;;  %p3192_p3 = scmp.ne.s32.totalorder %s3186_s25, 0 }
  0xac   : > { %s2421_s5 = scalar_lea.hbm %s3126_s0, 256  ;;  %p2422_p1 = scmp.lt.u32.totalorder %s2865_s28, %s3126_s0 }
  0xad   : > { %p2419_p11 = pnand %p2417_p13, %p3192_p3  ;;  %p2423_p8 = scmp.lt.u32.totalorder %s2421_s5, %s2416_s29 }
  0xae   : > { %p2425_p10 = scmp.lt.u32.totalorder %s2416_s29, %s2865_s28 }
  0xaf   : > { %p2420_p6 = pneg %p2419_p11  ;;  %p2424_p5 = por %p2423_p8, %p2422_p1 }
  0xb1   : > { %p2426_p2 = por %p2425_p10, %p2424_p5 }
  0xb3   : > { %p2427_p4 = pnand %p2426_p2, %p2420_p6 }
  0xb5   : > { %2430 = shalt.err (!%p2427_p4)
}
  0xb6   : > { %s2431_s15 = scalar_lea.vmem %s398_s20, 128  ;;  %s2563_s7 = smov [#allocation2]  }
  0xb7   : > { %p2432_p12 = scmp.ne.s32.totalorder %s398_s20, %s2431_s15  ;;  %s2436_s9 = sshll.u32 %s2563_s7, 4  ;;  %s2437_s9 = int_to_ptr.vmem [resolvable:$false] %s2436_s9 }
  0xb8   : > { %s2438_s14 = scalar_lea.vmem %s2437_s9, 256  ;;  %p2439_p9 = scmp.lt.s32.totalorder %s398_s20, %s2437_s9 }
  0xb9   : > { %p2434_p0 = pnand %p2432_p12, %p3192_p3  ;;  %p2440_p13 = scmp.lt.s32.totalorder %s2438_s14, %s2431_s15 }
  0xbb   : > { %p2435_p7 = pneg %p2434_p0  ;;  %p2441_p11 = por %p2440_p13, %p2439_p9 }
  0xbd   : > { %p2442_p1 = pnand %p2441_p11, %p2435_p7 }
  0xbf   : > { %2445 = shalt.err (!%p2442_p1)
}
  0xc0   : > { %p3193_p8 = scmp.ne.s32.totalorder %s3184_s12, 0  ;;  %s2891_s22 = scalar_lea.hbm %s3128_s2, %s2770_s11 }
  0xc1   : > { %s426_s29 = scalar_lea.vmem [#allocation7], %s2767_s10  ;;  %s2446_s3 = scalar_lea.hbm %s2891_s22, 128 }
  0xc2   : > { %2193 = dma.hbm_to_vmem [thread:$0]  (!%p3193_p8), %s2865_s28, 128, %s398_s20, %s387_s13  }
  0xc3   : > { %s433_s1 = sshll.u32 %s426_s29, 4  ;;  %p2447_p6 = scmp.ne.s32.totalorder %s2891_s22, %s2446_s3  ;;  %s434_s1 = int_to_ptr.vmem [resolvable:$true] %s433_s1 }
  0xc4   : > { %s2451_s28 = scalar_lea.hbm %s3128_s2, 256  ;;  %p2452_p2 = scmp.lt.u32.totalorder %s2891_s22, %s3128_s2 }
  0xc5   : > { %p2449_p5 = pnand %p2447_p6, %p3192_p3  ;;  %p2453_p4 = scmp.lt.u32.totalorder %s2451_s28, %s2446_s3 }
  0xc6   : > { %p2455_p0 = scmp.lt.u32.totalorder %s2446_s3, %s2891_s22 }
  0xc7   : > { %p2450_p10 = pneg %p2449_p5  ;;  %p2454_p12 = por %p2453_p4, %p2452_p2 }
  0xc9   : > { %p2456_p7 = por %p2455_p0, %p2454_p12 }
  0xcb   : > { %p2457_p9 = pnand %p2456_p7, %p2450_p10 }
  0xcd   : > { %2460 = shalt.err (!%p2457_p9)
}
  0xce   : > { %s2461_s10 = scalar_lea.vmem %s434_s1, 128  ;;  %s2564_s11 = smov [#allocation7]  }
  0xcf   : > { %p2462_p13 = scmp.ne.s32.totalorder %s434_s1, %s2461_s10  ;;  %s2466_s17 = sshll.u32 %s2564_s11, 4  ;;  %s2467_s17 = int_to_ptr.vmem [resolvable:$false] %s2466_s17 }
  0xd0   : > { %s2468_s15 = scalar_lea.vmem %s2467_s17, 256  ;;  %p2469_p6 = scmp.lt.s32.totalorder %s434_s1, %s2467_s17 }
  0xd1   : > { %p2464_p11 = pnand %p2462_p13, %p3192_p3  ;;  %p2470_p5 = scmp.lt.s32.totalorder %s2468_s15, %s2461_s10 }
  0xd3   : > { %p2465_p1 = pneg %p2464_p11  ;;  %p2471_p8 = por %p2470_p5, %p2469_p6 }
  0xd5   : > { %p2472_p2 = pnand %p2471_p8, %p2465_p1 }
  0xd7   : > { %2475 = shalt.err (!%p2472_p2)
}
  0xd8   : > { %p3194_p4 = scmp.ne.s32.totalorder %s3184_s12, 0  ;;  %p3195_p10 = scmp.ne.s32.totalorder %s3172_s24, 0 }
  0xd9   : > { %s2915_s25 = sand.u32 (!%p3195_p10), 1, %s2546_s18   ;;  %p3196_p3 = scmp.ne.s32.totalorder (!%p3195_p10), %s3179_s16, 0 }
  0xda   : > { %2199 = dma.hbm_to_vmem [thread:$0]  (!%p3194_p4), %s2891_s22, 128, %s434_s1, %s2788_s30  }
  0xdb   : > { %442 = sbr.rel (%p3195_p10) target bundleno = 3167 (0xc5f), region = 64  ;;  %s2918_s7 = sshll.u32 (!%p3195_p10), %s2915_s25, 3 }
  0xdc   : > { %s445_s9 = scalar_lea.sflag (!%p3195_p10), [#allocation3], %s2915_s25  ;;  %s448_s14 = scalar_lea.vmem (!%p3195_p10), [#allocation2], %s2918_s7 }
  0xe2   : > { %2521 = dma.done.wait (%p3196_p3), %s445_s9, 128  }
  0xe3   : > { %2523 = vsyncadd (%p3196_p3), %s445_s9, 4294967168  ;;  %s453_s24 = sand.u32 1, %s2653_s23   ;;  %s457_s12 = scalar_lea.vmem [#allocation5], %s2918_s7 }
  0xe4   : > { %s454_s30 = scalar_lea.sflag [#allocation6], %s453_s24 }
  0xe5   : > { %2525 = dma.done.wait (%p3196_p3), %s454_s30, 256  }
  0xe6   : > { %2527 = vsyncadd (%p3196_p3), %s454_s30, 4294967040  ;;  %s466_s21 = scalar_lea.vmem [#allocation7], %s2918_s7  ;;  %p3197_p8 = scmp.eq.s32.totalorder %s2653_s23, 0 }
  0xe8   : > { %2529 = dma.done.wait (%p3197_p8), [#allocation9], 4096   ;;  %p3198_p12 = pmov %p3197_p8 }
  0xe9   : > { %p3199_p0 = pmov %p3197_p8 }
  0xea   : > { %2531 = vsyncadd (%p3198_p12), [#allocation9], 4294963200 }
  0xeb   : > { %2533 = dma.done.wait (%p3199_p0), [#allocation12], 4096   ;;  %p3200_p7 = pmov %p3199_p0 }
  0xec   : > { %v2565_v0 = vmov 0.0|0.0   ;;  %vm2566_vm0 = vmmov 0   ;;  %v2567_v1 = vmov 0.0   ;;  %v626_v2 = vld [vmem:[#allocation10] sm:$0xff]  ;;  %v627_v3 = vld [vmem:[#allocation10 + $0x8] sm:$0xff]  ;;  %v628_v7 = vld [vmem:[#allocation10 + $0x10] sm:$0xff] }
  0xed   : > { %2535 = vsyncadd (%p3200_p7), [#allocation12], 4294963200  ;;  %2081 = vmatprep.subr.bf16.mxu1 %v2565_v0  ;;  %2057 = vmatprep.subr.bf16.mxu0 %v2565_v0  ;;  %v532_v4 = vld [vmem:[#allocation8] sm:$0xff]  ;;  %v2082_v5 = vpack.c.bf16 %v627_v3, %v626_v2  ;;  %v533_v6 = vld [vmem:[#allocation8 + $0x8] sm:$0xff]  ;;  %s3201_s1 = sld [smem:[#allocation29_spill]]  ;;  %vm813_vm1 = vcmask 261120  }
  0xee   : > { %1944 = vmatprep.mubr.msk.f32.mxu1 %vm2566_vm0, %v2567_v1  ;;  %1909 = vmatprep.mubr.msk.f32.mxu0 %vm2566_vm0, %v2567_v1  ;;  %v629_v8 = vld [vmem:[#allocation10 + $0x18] sm:$0xff]  ;;  %v2058_v9 = vpack.c.bf16 %v533_v6, %v532_v4  ;;  %v534_v10 = vld [vmem:[#allocation8 + $0x10] sm:$0xff]  ;;  %v630_v14 = vld [vmem:[#allocation10 + $0x20] sm:$0xff]  ;;  %s2568_s3 = smov 96   ;;  %vm891_vm2 = vcmask 64512   ;;  %s3202_s28 = sld [smem:[#allocation30_spill]] }
  0xef   : > { %v535_v11 = vld [vmem:[#allocation8 + $0x18] sm:$0xff]  ;;  %2083 = vmatpush3.bf16.msra.mxu1 %v2082_v5  ;;  %v2085_v12 = vpack.c.bf16 %v629_v8, %v628_v7  ;;  %v631_v15 = vld [vmem:[#allocation10 + $0x28] sm:$0xff]  ;;  %v536_v16 = vld [vmem:[#allocation8 + $0x20] sm:$0xff]  ;;  %s2569_s20 = smov 64   ;;  %s2570_s13 = smov 32   ;;  %vm1488_vm3 = vcmask 523264  }
  0xf0   : > { %2059 = vmatpush3.bf16.msra.mxu0 %v2058_v9  ;;  %2084 = vmatprep.subr.bf16.mxu1 %v2565_v0  ;;  %v2061_v13 = vpack.c.bf16 %v535_v11, %v534_v10  ;;  %v537_v17 = vld [vmem:[#allocation8 + $0x28] sm:$0xff]  ;;  %v2088_v18 = vpack.c.bf16 %v631_v15, %v630_v14  ;;  %v632_v20 = vld [vmem:[#allocation10 + $0x30] sm:$0xff]  ;;  %v633_v21 = vld [vmem:[#allocation10 + $0x38] sm:$0xff]  ;;  %vm1490_vm4 = vcmask 785408   ;;  %s3203_s10 = sld [smem:[#allocation24_spill]]  ;;  %s3204_s15 = sld [smem:[#allocation31_spill]] }
  0xf1   : > { %2060 = vmatprep.subr.bf16.mxu0 %v2565_v0  ;;  %v2064_v19 = vpack.c.bf16 %v537_v17, %v536_v16  ;;  %v538_v22 = vld [vmem:[#allocation8 + $0x30] sm:$0xff]  ;;  %v539_v23 = vld [vmem:[#allocation8 + $0x38] sm:$0xff]  ;;  %v2091_v24 = vpack.c.bf16 %v633_v21, %v632_v20  ;;  %v634_v26 = vld [vmem:[#allocation10 + $0x40] sm:$0xff]  ;;  %s1790_s9 = sshll.u32 %s2653_s23, 7  ;;  %s1587_s27 = scalar_lea.sflag [#allocation4], %s2915_s25 }
  0xf2   : > { %v2067_v25 = vpack.c.bf16 %v539_v23, %v538_v22  ;;  %v635_v27 = vld [vmem:[#allocation10 + $0x48] sm:$0xff]  ;;  %v540_v28 = vld [vmem:[#allocation8 + $0x40] sm:$0xff]  ;;  %v636_v32 = vld [vmem:[#allocation10 + $0x50] sm:$0xff]  ;;  %s2571_s23 = smov [#allocation14]  }
  0xf3   : > { %2086 = vmatpush3.bf16.msra.mxu1 %v2085_v12  ;;  %v541_v29 = vld [vmem:[#allocation8 + $0x48] sm:$0xff]  ;;  %v2094_v30 = vpack.c.bf16 %v635_v27, %v634_v26  ;;  %v637_v33 = vld [vmem:[#allocation10 + $0x58] sm:$0xff]  ;;  %v542_v34 = vld [vmem:[#allocation8 + $0x50] sm:$0xff] }
  0xf4   : > { %2062 = vmatpush3.bf16.msra.mxu0 %v2061_v13  ;;  %2087 = vmatprep.subr.bf16.mxu1 %v2565_v0  ;;  %v2070_v31 = vpack.c.bf16 %v541_v29, %v540_v28  ;;  %v543_v35 = vld [vmem:[#allocation8 + $0x58] sm:$0xff]  ;;  %v2097_v36 = vpack.c.bf16 %v637_v33, %v636_v32  ;;  %v638_v38 = vld [vmem:[#allocation10 + $0x60] sm:$0xff]  ;;  %v639_v39 = vld [vmem:[#allocation10 + $0x68] sm:$0xff] }
  0xf5   : > { %2063 = vmatprep.subr.bf16.mxu0 %v2565_v0  ;;  %v2073_v37 = vpack.c.bf16 %v543_v35, %v542_v34  ;;  %v544_v40 = vld [vmem:[#allocation8 + $0x60] sm:$0xff]  ;;  %v545_v41 = vld [vmem:[#allocation8 + $0x68] sm:$0xff]  ;;  %v2100_v42 = vpack.c.bf16 %v639_v39, %v638_v38  ;;  %v640_v44 = vld [vmem:[#allocation10 + $0x70] sm:$0xff] }
  0xf6   : > { %v2076_v43 = vpack.c.bf16 %v545_v41, %v544_v40  ;;  %v641_v45 = vld [vmem:[#allocation10 + $0x78] sm:$0xff]  ;;  %v546_v46 = vld [vmem:[#allocation8 + $0x70] sm:$0xff]  ;;  %v625_v50 = vld [vmem:[%s457_s12] sm:$0xff]  ;;  %p3206_p13 = scmp.ne.s32.totalorder %s3203_s10, 0 }
  0xf7   : > { %2089 = vmatpush3.bf16.msra.mxu1 %v2088_v18  ;;  %v547_v47 = vld [vmem:[#allocation8 + $0x78] sm:$0xff]  ;;  %v2103_v48 = vpack.c.bf16 %v641_v45, %v640_v44  ;;  %v1774_v52 = vld [vmem:[%s3134_s8] ss:$0 sm:$0xff]  ;;  %v720_v60 = vld [vmem:[#allocation11] sm:$0xff] }
  0xf8   : > { %2065 = vmatpush3.bf16.msra.mxu0 %v2064_v19  ;;  %2090 = vmatprep.subr.bf16.mxu1 %v2565_v0  ;;  %v2079_v49 = vpack.c.bf16 %v547_v47, %v546_v46  ;;  %v531_v51 = vld [vmem:[%s448_s14] sm:$0xff]  ;;  %v721_v61 = vld [vmem:[#allocation11 + $0x8] sm:$0xff]  ;;  %v724_v4 = vld [vmem:[#allocation11 + $0x20] sm:$0xff]  ;;  %s530_s14 = scalar_lea.vmem [#allocation14], %s2918_s7  ;;  %s2480_s7 = sshll.u32 %s2571_s23, 4  ;;  %s2481_s7 = int_to_ptr.vmem [resolvable:$false] %s2480_s7 }
  0xf9   : > { %2066 = vmatprep.subr.bf16.mxu0 %v2565_v0  ;;  %v1773_v53 = vld [vmem:[%s3201_s1] ss:$0 sm:$0xff]  ;;  %v2106_v63 = vpack.c.bf16 %v721_v61, %v720_v60  ;;  %v723_v2 = vld [vmem:[#allocation11 + $0x18] sm:$0xff]  ;;  %v725_v5 = vld [vmem:[#allocation11 + $0x28] sm:$0xff]  ;;  %s1600_s24 = sshll.u32 %s530_s14, 4  ;;  %s2482_s29 = scalar_lea.vmem %s2481_s7, 256  ;;  %s3084_s24 = int_to_ptr.vmem [resolvable:$true] %s1600_s24 }
  0xfa   : > { %v722_v62 = vld [vmem:[#allocation11 + $0x10] sm:$0xff]  ;;  %v2112_v6 = vpack.c.bf16 %v725_v5, %v724_v4  ;;  %v727_v8 = vld [vmem:[#allocation11 + $0x38] sm:$0xff]  ;;  %v728_v10 = vld [vmem:[#allocation11 + $0x40] sm:$0xff]  ;;  %s2476_s22 = scalar_lea.vmem %s3084_s24, 128  ;;  %p2483_p6 = scmp.lt.s32.totalorder %s3084_s24, %s2481_s7 }
  0xfb   : > { %2092 = vmatpush3.bf16.msra.mxu1 %v2091_v24  ;;  %v2109_v3 = vpack.c.bf16 %v723_v2, %v722_v62  ;;  %v726_v7 = vld [vmem:[#allocation11 + $0x30] sm:$0xff]  ;;  %v729_v11 = vld [vmem:[#allocation11 + $0x48] sm:$0xff]  ;;  %v731_v14 = vld [vmem:[#allocation11 + $0x58] sm:$0xff]  ;;  %p2477_p9 = scmp.ne.s32.totalorder %s3084_s24, %s2476_s22  ;;  %p2484_p5 = scmp.lt.s32.totalorder %s2482_s29, %s2476_s22 }
  0xfc   : > { %2068 = vmatpush3.bf16.msra.mxu0 %v2067_v25  ;;  %2093 = vmatprep.subr.bf16.mxu1 %v2565_v0  ;;  %v2115_v9 = vpack.c.bf16 %v727_v8, %v726_v7  ;;  %v2118_v12 = vpack.c.bf16 %v729_v11, %v728_v10  ;;  %v730_v13 = vld [vmem:[#allocation11 + $0x50] sm:$0xff]  ;;  %v732_v16 = vld [vmem:[#allocation11 + $0x60] sm:$0xff]  ;;  %v733_v17 = vld [vmem:[#allocation11 + $0x68] sm:$0xff] }
  0xfd   : > { %2069 = vmatprep.subr.bf16.mxu0 %v2565_v0  ;;  %v2121_v15 = vpack.c.bf16 %v731_v14, %v730_v13  ;;  %v2124_v18 = vpack.c.bf16 %v733_v17, %v732_v16  ;;  %v734_v19 = vld [vmem:[#allocation11 + $0x70] sm:$0xff]  ;;  %v735_v20 = vld [vmem:[#allocation11 + $0x78] sm:$0xff]  ;;  %p2478_p11 = pnand %p2477_p9, %p3206_p13  ;;  %p2485_p2 = por %p2484_p5, %p2483_p6 }
  0xfe   : > { %v2127_v21 = vpack.c.bf16 %v735_v20, %v734_v19  ;;  %v719_v22 = vld [vmem:[%s466_s21] sm:$0xff]  ;;  %s3205_s21 = sld [smem:[#allocation32_spill]] }
  0xff   : > { %2095 = vmatpush3.bf16.msra.mxu1 %v2094_v30  ;;  %v1775_v32 = vld [vmem:[%s3202_s28] ss:$0 sm:$0xff]  ;;  %p2479_p1 = pneg %p2478_p11 }
 0x100   : > { %2071 = vmatpush3.bf16.msra.mxu0 %v2070_v31  ;;  %2096 = vmatprep.subr.bf16.mxu1 %v2565_v0 }
 0x101   : > { %2072 = vmatprep.subr.bf16.mxu0 %v2565_v0  ;;  %p2486_p4 = pnand %p2485_p2, %p2479_p1 }
 0x103   : > { %2098 = vmatpush3.bf16.msra.mxu1 %v2097_v36 }
 0x104   : > { %2074 = vmatpush3.bf16.msra.mxu0 %v2073_v37  ;;  %2099 = vmatprep.subr.bf16.mxu1 %v2565_v0  ;;  %s3082_s16 = scalar_lea.hbm %s3205_s21, %s1790_s9 }
 0x105   : > { %2075 = vmatprep.subr.bf16.mxu0 %v2565_v0 }
 0x107   : > { %2101 = vmatpush3.bf16.msra.mxu1 %v2100_v42 }
 0x108   : > { %2077 = vmatpush3.bf16.msra.mxu0 %v2076_v43  ;;  %2102 = vmatprep.subr.bf16.mxu1 %v2565_v0 }
 0x109   : > { %2078 = vmatprep.subr.bf16.mxu0 %v2565_v0 }
 0x10b   : > { %2104 = vmatpush3.bf16.msra.mxu1 %v2103_v48 }
 0x10c   : > { %2080 = vmatpush3.bf16.msra.mxu0 %v2079_v49  ;;  %1982 = vmatprep.subr.mxu1 %v2567_v1 }
 0x10d   : > { %2105 = vmatprep.subr.bf16.mxu0 %v2565_v0 }
 0x10e   : > { %1945 = vmatmul.mubr.f32.vlgmr.msra.gmra.mrb[0].mxu1 %v625_v50 }
 0x10f   : > { %1910 = vmatmul.mubr.f32.vlgmr.msra.gmra.mrb[0].mxu0 %v531_v51  ;;  %1984 = vmatprep.mubr.msk.f32.mxu1 %vm2566_vm0, %v2567_v1 }
 0x110   : > { %1979 = vmatprep.mubr.msk.f32.mxu0 %vm2566_vm0, %v2567_v1  ;;  %2107 = vmatpush3.bf16.msra.mxu0 %v2106_v63 }
 0x111   : > { %2108 = vmatprep.subr.bf16.mxu0 %v2565_v0 }
 0x114   : > { %2110 = vmatpush3.bf16.msra.mxu0 %v2109_v3 }
 0x115   : > { %2111 = vmatprep.subr.bf16.mxu0 %v2565_v0 }
 0x118   : > { %2113 = vmatpush3.bf16.msra.mxu0 %v2112_v6 }
 0x119   : > { %2114 = vmatprep.subr.bf16.mxu0 %v2565_v0 }
 0x11c   : > { %2116 = vmatpush3.bf16.msra.mxu0 %v2115_v9 }
 0x11d   : > { %2117 = vmatprep.subr.bf16.mxu0 %v2565_v0 }
 0x120   : > { %2119 = vmatpush3.bf16.msra.mxu0 %v2118_v12 }
 0x121   : > { %2120 = vmatprep.subr.bf16.mxu0 %v2565_v0 }
 0x124   : > { %2122 = vmatpush3.bf16.msra.mxu0 %v2121_v15 }
 0x125   : > { %2123 = vmatprep.subr.bf16.mxu0 %v2565_v0 }
 0x128   : > { %2125 = vmatpush3.bf16.msra.mxu0 %v2124_v18 }
 0x129   : > { %2126 = vmatprep.subr.bf16.mxu0 %v2565_v0 }
 0x12c   : > { %2128 = vmatpush3.bf16.msra.mxu0 %v2127_v21 }
 0x12d   : > { %2129 = vmatprep.subr.bf16.mxu0 %v2565_v0 }
 0x12f   : > { %1980 = vmatmul.mubr.f32.vlgmr.msra.gmra.mrb[2].mxu0 %v719_v22 }
 0x130   : > { %2054 = vmatprep.mubr.msk.f32.mxu0 %vm2566_vm0, %v2567_v1 }
 0x1e1   : > { %v715_v54 = vpop.f32.mrb[0].mxu1 }
 0x1e2   : > { %v2977_v55 = vadd.f32 %v1774_v52, %v715_v54  ;;  %v1946_v56 = vpop.f32.mrb[1].mxu1  ;;  %v621_v57 = vpop.f32.mrb[0].mxu0 }
 0x1e3   : > { %v2979_v58 = vadd.f32 %v1773_v53, %v621_v57  ;;  %v1911_v59 = vpop.f32.mrb[1].mxu0 }
 0x1e4   : > { %978 = vrot.lane.b32.xlu1 %v2977_v55, %s2568_s3  ;;  %1983 = vmatpush3.xpose.msk.msra.mxu1 %vm813_vm1, %v2977_v55 }
 0x1e5   : > { %1987 = vmatprep.subr.mxu1 %v2567_v1 }
 0x1e7   : > { %1985 = vmatmul.mubr.msk.f32.vlgmr.msra.gmra.mrb[2].mxu1 %vm813_vm1, %v2979_v58 }
 0x1e8   : > { %976 = vrot.lane.b32.xlu1 %v2979_v58, %s2568_s3  ;;  %1989 = vmatprep.mubr.msk.f32.mxu1 %vm2566_vm0, %v2567_v1 }
 0x202   : > { %v809_v33 = vpop.f32.mrb[2].mxu0 }
 0x203   : > { %v3009_v34 = vadd.f32 %v1775_v32, %v809_v33  ;;  %v1981_v35 = vpop.f32.mrb[3].mxu0  ;;  %v1496_v33 = vld [vmem:[#allocation13 + $0x20] sm:$0xff] }
 0x205   : > { %1988 = vmatpush3.msra.mxu1 %v3009_v34 }
 0x206   : > { %1992 = vmatprep.subr.mxu1 %v2567_v1 }
 0x256   : > { %v979_v38 = vpop.permute.xlu1 %978 }
 0x25a   : > { %v977_v40 = vpop.permute.xlu1 %976 }
 0x2ba   : > { %v886_v23 = vpop.f32.mrb[2].mxu1 }
 0x2bb   : > { %v890_v24 = vmul.f32 0.17677669, %v886_v23  ;;  %v1986_v25 = vpop.f32.mrb[3].mxu1 }
 0x2bd   : > { %v892_v26 = vsel %vm891_vm2, %v890_v24, -inf }
 0x2be   : > { %893 = vmax.xlane.f32.xlu0 %v892_v26 }
 0x34b   : > { %v894_v27 = vpop.xlane.xlu0 %893 }
 0x34c   : > { %v895_v28 = vsub.f32 %v890_v24, %v894_v27  ;;  %v1492_v27 = vld [vmem:[#allocation13] sm:$0xff] }
 0x34e   : > { %v896_v29 = vmul.f32 1.442695, %v895_v28  ;;  %v1493_v28 = vld [vmem:[#allocation13 + $0x8] sm:$0xff] }
 0x350   : > { %2258 = vpow2.f32 %v896_v29  ;;  %v1494_v29 = vld [vmem:[#allocation13 + $0x10] sm:$0xff] }
 0x35a   : > { %v2259_v30 = vpop.eup %2258 }
 0x35b   : > { %v898_v31 = vsel %vm891_vm2, %v2259_v30, 0.0 }
 0x35c   : > { %899 = vadd.xlane.f32.xlu0 %v898_v31  ;;  %v1495_v31 = vld [vmem:[#allocation13 + $0x18] sm:$0xff] }
 0x35d   : > { %v2133_v32 = vpack.c.bf16 %v1495_v31, %v1494_v29 }
 0x3e9   : > { %v900_v36 = vpop.xlane.xlu0 %899 }
 0x3ea   : > { %2260 = vrcp.f32 %v900_v36  ;;  %v1498_v36 = vld [vmem:[#allocation13 + $0x30] sm:$0xff] }
 0x3f4   : > { %v2261_v37 = vpop.eup %2260 }
 0x3f5   : > { %v902_v39 = vmul.f32 %v2261_v37, %v2259_v30  ;;  %v2130_v30 = vpack.c.bf16 %v1493_v28, %v1492_v27  ;;  %v1499_v37 = vld [vmem:[#allocation13 + $0x38] sm:$0xff] }
 0x3f7   : > { %1990 = vmatmul.mubr.msk.f32.vlgmr.msra.gmra.mrb[4].mxu1 %vm891_vm2, %v902_v39  ;;  %2131 = vmatpush3.bf16.msra.mxu0 %v2130_v30  ;;  %v1500_v39 = vld [vmem:[#allocation13 + $0x40] sm:$0xff] }
 0x3f8   : > { %1993 = vmatpush3.xpose.msk.msra.mxu1 %vm813_vm1, %v979_v38  ;;  %1994 = vmatprep.mubr.msk.f32.mxu1 %vm2566_vm0, %v2567_v1  ;;  %v2139_v38 = vpack.c.bf16 %v1499_v37, %v1498_v36 }
 0x3f9   : > { %1997 = vmatprep.subr.mxu1 %v2567_v1  ;;  %2132 = vmatprep.subr.bf16.mxu0 %v2565_v0 }
 0x3fb   : > { %1995 = vmatmul.mubr.msk.f32.vlgmr.msra.gmra.mrb[6].mxu1 %vm813_vm1, %v977_v40  ;;  %2134 = vmatpush3.bf16.msra.mxu0 %v2133_v32  ;;  %v1501_v40 = vld [vmem:[#allocation13 + $0x48] sm:$0xff] }
 0x3fc   : > { %1999 = vmatprep.mubr.msk.f32.mxu1 %vm2566_vm0, %v2567_v1  ;;  %2135 = vmatprep.subr.bf16.mxu0 %v2565_v0 }
 0x4ca   : > { %v3021_v41 = vpop.f32.mrb[4].mxu1 }
 0x4cb   : > { %v1991_v42 = vpop.f32.mrb[5].mxu1 }
 0x4cc   : > { %v2142_v42 = vpack.c.bf16 %v1501_v40, %v1500_v39 }
 0x4ce   : > { %v1050_v43 = vpop.f32.mrb[6].mxu1 }
 0x4cf   : > { %v1054_v44 = vmul.f32 0.17677669, %v1050_v43  ;;  %v1996_v45 = vpop.f32.mrb[7].mxu1  ;;  %v1502_v43 = vld [vmem:[#allocation13 + $0x50] sm:$0xff] }
 0x4d1   : > { %v1055_v46 = vsel %vm891_vm2, %v1054_v44, -inf }
 0x4d2   : > { %1056 = vmax.xlane.f32.xlu0 %v1055_v46  ;;  %v1504_v46 = vld [vmem:[#allocation13 + $0x60] sm:$0xff] }
 0x4e8   : > { %1067 = vrot.lane.b32.xlu0 %v3009_v34, %s2568_s3 }
 0x4ec   : > { %1145 = vrot.lane.b32.xlu0 %v2977_v55, %s2569_s20 }
 0x4f0   : > { %1143 = vrot.lane.b32.xlu0 %v2979_v58, %s2569_s20 }
 0x55f   : > { %v1057_v47 = vpop.xlane.xlu0 %1056 }
 0x560   : > { %v1058_v48 = vsub.f32 %v1054_v44, %v1057_v47  ;;  %v1503_v44 = vld [vmem:[#allocation13 + $0x58] sm:$0xff]  ;;  %v1505_v47 = vld [vmem:[#allocation13 + $0x68] sm:$0xff] }
 0x561   : > { %v2145_v45 = vpack.c.bf16 %v1503_v44, %v1502_v43 }
 0x562   : > { %v1059_v49 = vmul.f32 1.442695, %v1058_v48  ;;  %v2148_v48 = vpack.c.bf16 %v1505_v47, %v1504_v46 }
 0x563   : > { %v1068_v50 = vpop.permute.xlu0 %1067 }
 0x564   : > { %2262 = vpow2.f32 %v1059_v49  ;;  %1998 = vmatpush3.msra.mxu1 %v1068_v50  ;;  %v1506_v49 = vld [vmem:[#allocation13 + $0x70] sm:$0xff]  ;;  %v1507_v50 = vld [vmem:[#allocation13 + $0x78] sm:$0xff] }
 0x565   : > { %2002 = vmatprep.subr.mxu1 %v2567_v1 }
 0x567   : > { %v1146_v56 = vpop.permute.xlu0 %1145 }
 0x56b   : > { %v1144_v59 = vpop.permute.xlu0 %1143 }
 0x56e   : > { %v2263_v51 = vpop.eup %2262 }
 0x56f   : > { %v1061_v52 = vsel %vm891_vm2, %v2263_v51, 0.0 }
 0x570   : > { %1062 = vadd.xlane.f32.xlu1 %v1061_v52 }
 0x581   : > { %1233 = vrot.lane.b32.xlu1 %v3009_v34, %s2569_s20 }
 0x585   : > { %1311 = vrot.lane.b32.xlu1 %v2977_v55, %s2570_s13 }
 0x5fd   : > { %v1063_v53 = vpop.xlane.xlu1 %1062 }
 0x5fe   : > { %2264 = vrcp.f32 %v1063_v53 }
 0x601   : > { %v1234_v60 = vpop.permute.xlu1 %1233 }
 0x605   : > { %v1312_v9 = vpop.permute.xlu1 %1311 }
 0x608   : > { %v2265_v54 = vpop.eup %2264 }
 0x609   : > { %v1065_v57 = vmul.f32 %v2265_v54, %v2263_v51  ;;  %v2151_v51 = vpack.c.bf16 %v1507_v50, %v1506_v49 }
 0x60b   : > { %2000 = vmatmul.mubr.msk.f32.vlgmr.msra.gmra.mrb[8].mxu1 %vm891_vm2, %v1065_v57 }
 0x60c   : > { %2003 = vmatpush3.xpose.msk.msra.mxu1 %vm813_vm1, %v1146_v56  ;;  %2004 = vmatprep.mubr.msk.f32.mxu1 %vm2566_vm0, %v2567_v1 }
 0x60d   : > { %2007 = vmatprep.subr.mxu1 %v2567_v1 }
 0x60f   : > { %2005 = vmatmul.mubr.msk.f32.vlgmr.msra.gmra.mrb[10].mxu1 %vm813_vm1, %v1144_v59 }
 0x610   : > { %2008 = vmatpush3.msra.mxu1 %v1234_v60  ;;  %2009 = vmatprep.mubr.msk.f32.mxu1 %vm2566_vm0, %v2567_v1 }
 0x611   : > { %2012 = vmatprep.subr.mxu1 %v2567_v1 }
 0x6de   : > { %v1139_v55 = vpop.f32.mrb[8].mxu1 }
 0x6df   : > { %v2001_v61 = vpop.f32.mrb[9].mxu1 }
 0x6e2   : > { %v1217_v62 = vpop.f32.mrb[10].mxu1 }
 0x6e3   : > { %v1221_v63 = vmul.f32 0.17677669, %v1217_v62  ;;  %v2006_v2 = vpop.f32.mrb[11].mxu1 }
 0x6e5   : > { %v1222_v3 = vsel %vm891_vm2, %v1221_v63, -inf }
 0x6e6   : > { %1223 = vmax.xlane.f32.xlu0 %v1222_v3 }
 0x773   : > { %v1224_v4 = vpop.xlane.xlu0 %1223 }
 0x774   : > { %v1225_v5 = vsub.f32 %v1221_v63, %v1224_v4 }
 0x776   : > { %v1226_v6 = vmul.f32 1.442695, %v1225_v5 }
 0x778   : > { %2266 = vpow2.f32 %v1226_v6 }
 0x782   : > { %v2267_v7 = vpop.eup %2266 }
 0x783   : > { %v1228_v8 = vsel %vm891_vm2, %v2267_v7, 0.0 }
 0x784   : > { %1229 = vadd.xlane.f32.xlu1 %v1228_v8 }
 0x795   : > { %1309 = vrot.lane.b32.xlu1 %v2979_v58, %s2570_s13 }
 0x811   : > { %v1230_v10 = vpop.xlane.xlu1 %1229 }
 0x812   : > { %2268 = vrcp.f32 %v1230_v10 }
 0x815   : > { %v1310_v13 = vpop.permute.xlu1 %1309 }
 0x81c   : > { %v2269_v11 = vpop.eup %2268 }
 0x81d   : > { %v1232_v12 = vmul.f32 %v2269_v11, %v2267_v7 }
 0x81f   : > { %2010 = vmatmul.mubr.msk.f32.vlgmr.msra.gmra.mrb[12].mxu1 %vm891_vm2, %v1232_v12 }
 0x820   : > { %2013 = vmatpush3.xpose.msk.msra.mxu1 %vm813_vm1, %v1312_v9  ;;  %2014 = vmatprep.mubr.msk.f32.mxu1 %vm2566_vm0, %v2567_v1 }
 0x821   : > { %2017 = vmatprep.subr.mxu1 %v2567_v1 }
 0x823   : > { %2015 = vmatmul.mubr.msk.f32.vlgmr.msra.gmra.mrb[14].mxu1 %vm813_vm1, %v1310_v13 }
 0x824   : > { %2019 = vmatprep.mubr.msk.f32.mxu1 %vm2566_vm0, %v2567_v1 }
 0x8f2   : > { %v1305_v58 = vpop.f32.mrb[12].mxu1 }
 0x8f3   : > { %v2011_v14 = vpop.f32.mrb[13].mxu1 }
 0x8f6   : > { %v1383_v15 = vpop.f32.mrb[14].mxu1 }
 0x8f7   : > { %v1387_v16 = vmul.f32 0.17677669, %v1383_v15  ;;  %v2016_v17 = vpop.f32.mrb[15].mxu1 }
 0x8f9   : > { %v1388_v18 = vsel %vm891_vm2, %v1387_v16, -inf }
 0x8fa   : > { %1389 = vmax.xlane.f32.xlu0 %v1388_v18 }
 0x910   : > { %1399 = vrot.lane.b32.xlu0 %v3009_v34, %s2570_s13  ;;  %v1497_v34 = vld [vmem:[#allocation13 + $0x28] sm:$0xff] }
 0x911   : > { %v2136_v35 = vpack.c.bf16 %v1497_v34, %v1496_v33 }
 0x913   : > { %2137 = vmatpush3.bf16.msra.mxu0 %v2136_v35 }
 0x914   : > { %1476 = vrot.lane.b32.xlu0 %v1139_v55, %s2570_s13  ;;  %2138 = vmatprep.subr.bf16.mxu0 %v2565_v0 }
 0x917   : > { %2140 = vmatpush3.bf16.msra.mxu0 %v2139_v38 }
 0x918   : > { %1480 = vrot.lane.b32.xlu0 %v1305_v58, %s2569_s20  ;;  %2141 = vmatprep.subr.bf16.mxu0 %v2565_v0 }
 0x91b   : > { %2143 = vmatpush3.bf16.msra.mxu0 %v2142_v42 }
 0x91c   : > { %2144 = vmatprep.subr.bf16.mxu0 %v2565_v0 }
 0x91f   : > { %2146 = vmatpush3.bf16.msra.mxu0 %v2145_v45 }
 0x920   : > { %2147 = vmatprep.subr.bf16.mxu0 %v2565_v0 }
 0x923   : > { %2149 = vmatpush3.bf16.msra.mxu0 %v2148_v48 }
 0x924   : > { %2150 = vmatprep.subr.bf16.mxu0 %v2565_v0  ;;  %v1788_v0 = vld [vmem:[%s3204_s15] ss:$0 sm:$0xff] }
 0x927   : > { %2152 = vmatpush3.bf16.msra.mxu0 %v2151_v51 }
 0x987   : > { %v1390_v19 = vpop.xlane.xlu0 %1389 }
 0x988   : > { %v1391_v20 = vsub.f32 %v1387_v16, %v1390_v19 }
 0x98a   : > { %v1392_v21 = vmul.f32 1.442695, %v1391_v20 }
 0x98b   : > { %v1400_v22 = vpop.permute.xlu0 %1399 }
 0x98c   : > { %2270 = vpow2.f32 %v1392_v21  ;;  %2018 = vmatpush3.msra.mxu1 %v1400_v22 }
 0x98f   : > { %v1477_v54 = vpop.permute.xlu0 %1476 }
 0x990   : > { %v1487_v57 = vsel %vm813_vm1, %v3021_v41, %v1477_v54 }
 0x993   : > { %v1481_v56 = vpop.permute.xlu0 %1480 }
 0x994   : > { %v1489_v59 = vsel %vm1488_vm3, %v1487_v57, %v1481_v56 }
 0x996   : > { %v2271_v1 = vpop.eup %2270 }
 0x997   : > { %v1394_v23 = vsel %vm891_vm2, %v2271_v1, 0.0 }
 0x998   : > { %1395 = vadd.xlane.f32.xlu1 %v1394_v23 }
 0xa25   : > { %v1396_v24 = vpop.xlane.xlu1 %1395 }
 0xa26   : > { %2272 = vrcp.f32 %v1396_v24 }
 0xa30   : > { %v2273_v25 = vpop.eup %2272 }
 0xa31   : > { %v1398_v26 = vmul.f32 %v2273_v25, %v2271_v1 }
 0xa33   : > { %2020 = vmatmul.mubr.msk.f32.vlgmr.msra.gmra.mrb[16].mxu1 %vm891_vm2, %v1398_v26 }
 0xb06   : > { %v1471_v52 = vpop.f32.mrb[16].mxu1 }
 0xb07   : > { %1484 = vrot.lane.b32.xlu0 %v1471_v52, %s2568_s3  ;;  %v2021_v53 = vpop.f32.mrb[17].mxu1 }
 0xb79   : > { %v1485_v60 = vpop.permute.xlu0 %1484 }
 0xb7a   : > { %v1491_v55 = vsel %vm1490_vm4, %v1489_v59, %v1485_v60 }
 0xb7b   : > { %2055 = vmatmul.mubr.f32.vlgmr.msra.gmra.mrb[4].mxu0 %v1491_v55 }
 0xc4e   : > { %v1581_v61 = vpop.f32.mrb[4].mxu0 }
 0xc4f   : > { %v1582_v62 = vadd.f32 %v1788_v0, %v1581_v61  ;;  %v2056_v63 = vpop.f32.mrb[5].mxu0 }
 0xc51   : > { %1585 = vst [vmem:[%s530_s14] sm:$0xff] %v1582_v62 }
 0xc52   : > { %2489 = shalt.err (!%p2486_p4)
}
 0xc53   : > { %s2490_s25 = scalar_lea.hbm %s3082_s16, 128  ;;  %s2494_s5 = scalar_lea.hbm %s3205_s21, 256 }
 0xc54   : > { %p2491_p10 = scmp.ne.s32.totalorder %s3082_s16, %s2490_s25  ;;  %p2495_p12 = scmp.lt.u32.totalorder %s3082_s16, %s3205_s21 }
 0xc55   : > { %p2496_p0 = scmp.lt.u32.totalorder %s2494_s5, %s2490_s25  ;;  %p2498_p9 = scmp.lt.u32.totalorder %s2490_s25, %s3082_s16 }
 0xc56   : > { %p2492_p3 = pnand %p2491_p10, %p3206_p13 }
 0xc57   : > { %p2497_p7 = por %p2496_p0, %p2495_p12 }
 0xc58   : > { %p2493_p8 = pneg %p2492_p3 }
 0xc59   : > { %p2499_p11 = por %p2498_p9, %p2497_p7 }
 0xc5b   : > { %p2500_p1 = pnand %p2499_p11, %p2493_p8 }
 0xc5d   : > { %2503 = shalt.err (!%p2500_p1)
}
 0xc5e   : > { %2175 = dma.vmem_to_hbm [thread:$0]  (%p3206_p13), %s3084_s24, 128, %s3082_s16, %s1587_s27  }
 0xc5f PF: > { %s3207_s20 = sld [smem:[#allocation20_spill]]  ;;  %s3208_s13 = sld [smem:[#allocation25_spill]] }
 0xc60   : > { %s3209_s11 = sld [smem:[#allocation21_spill]] }
 0xc65   : > { %s1612_s17 = sand.u32 1, %s3207_s20   ;;  %p3210_p6 = scmp.ne.s32.totalorder %s3208_s13, 0 }
 0xc66   : > { %p3211_p5 = scmp.ge.s32.totalorder %s3209_s11, 2  ;;  %s1613_s15 = scalar_lea.sflag [#allocation4], %s1612_s17 }
 0xc68   : > { %p2201_p2 = pnand %p3211_p5, %p3210_p6 }
 0xc6a   : > { %2537 = dma.done.wait (!%p2201_p2), %s1613_s15, 128  }
 0xc6b   : > { %2539 = vsyncadd (!%p2201_p2), %s1613_s15, 4294967168  ;;  %s3212_s20 = sld [smem:[#allocation22_spill]]  ;;  %s3213_s9 = sld [smem:[#allocation23_spill]] }
 0xc6c   : > { %s3214_s17 = smov %s2546_s18  ;;  %s3215_s18 = smov %s2550_s19 }
 0xc71   : > { %p29_p4 = scmp.ge.s32.totalorder %s3212_s20, 4   ;;  %s3216_s19 = smov %s3213_s9 }
 0xc73   :  { %31 = sbr.rel (!%p29_p4) target bundleno = 17 (0x11), region = 149 }
 0xc7a   :  { %1618 = vsyncpa [#allocation3], 1 }
 0xc7b   :  { %1620 = vsyncpa [#allocation3 + $0x1], 1 }
 0xc7c   :  { %1621 = vsyncpa [#allocation6], 1 }
 0xc7d   :  { %1623 = vsyncpa [#allocation6 + $0x1], 1 }
 0xc7e   :  { %1624 = vsyncpa [#allocation9], 1 }
 0xc7f   :  { %1625 = vsyncpa [#allocation12], 1 }
 0xc80   :  { %1626 = vsyncpa [#allocation4], 1 }
 0xc81   :  { %1628 = vsyncpa [#allocation4 + $0x1], 1 }

</bundles_post_ra>
